<compile_context>
chip_gen: v5e
topology: v5e:2x2
jax: 0.10.0
libtpu: 0.0.40
codegen_flags: <defaults>
</compile_context>

<pallas_src>
import jax
import jax.numpy as jnp
from jax import lax
from jax.experimental import pallas as pl
from jax.experimental.pallas import tpu as pltpu


def _make_kernel(B, C_IN, C_OUT, F_H, F_W, S_H, S_W, H_OUT, W_OUT):
    M = B * H_OUT * W_OUT

    def kernel(xph_ref, w_ref, bias_ref, o_ref):
        f32 = jnp.float32

        # ---- im2col: gather the F_H*F_W depthwise taps into a (M, K) lhs ----
        # Every tap is a contiguous unit-stride slice of a stride-phase plane
        # (phase split was done by the wrapper), so these are plain vld's.
        cols = []
        for kh in range(F_H):
            ph, dh = kh % S_H, kh // S_H
            for kw in range(F_W):
                pw, dw = kw % S_W, kw // S_W
                tap = xph_ref[ph * S_W + pw, :,
                              dh:dh + H_OUT,
                              dw:dw + W_OUT, :]          # (B, H_OUT, W_OUT, C_IN)
                # leading-dim merge only (minor dim unchanged) -> free reshape
                cols.append(tap.reshape(M, C_IN).astype(f32))
        lhs = jnp.concatenate(cols, axis=1)              # (M, F_H*F_W*C_IN)

        # ---- depthwise + both 1x1 convs + all BN folds in ONE MXU call ------
        # y[n, m] = sum_k w_ref[n, k] * lhs[m, k]   (trans-B matmul)
        y = lax.dot_general(w_ref[...], lhs, (((1,), (1,)), ((), ())),
                            preferred_element_type=f32)  # (2*C_OUT, M)
        y = y + bias_ref[...]

        # rows [0, C_OUT): sep branch (pre-ReLU); rows [C_OUT, 2*C_OUT): residual
        o_ref[...] = (jnp.maximum(y[0:C_OUT, :], 0.0)
                      + y[C_OUT:2 * C_OUT, :]).astype(o_ref.dtype)

    return kernel


def fold_params(raw, kernel_size, stride, x_shape):
    """Host-side precompute: fold BN1/BN2/BN3/BN_r (+ residual bias) into a
    single (2*C_OUT, F_H*F_W*C_IN) block weight and a (2*C_OUT, M) bias map."""
    F_H, F_W = kernel_size
    S_H, S_W = stride
    B, C_IN, H, W = x_shape
    PAD_T, PAD_L = F_H // 2, F_W - 1
    HP, WP = H + 2 * PAD_T, W + PAD_L
    H_OUT = (HP - F_H) // S_H + 1
    W_OUT = (WP - F_W) // S_W + 1
    M = B * H_OUT * W_OUT

    s1, t1 = raw["s1"], raw["t1"]
    s2, t2 = raw["s2"], raw["t2"]
    s3, t3 = raw["s3"], raw["t3"]
    sr, tr = raw["sr"], raw["tr"]
    C_OUT = s3.shape[0]

    w_dw = raw["w_dw"][:, 0, :, :]                       # (C_IN, F_H, F_W)
    w_pw = raw["w_pw"][:, :, 0, 0]                       # (C_OUT, C_IN)
    w_res = raw["w_res"][:, :, 0, 0]                     # (C_OUT, C_IN)

    # BN2 -> 1x1 conv -> BN3   ==   (.) @ w_fx + b_fx
    w_fx = (s2[:, None] * w_pw.T) * s3[None, :]          # (C_IN, C_OUT)
    b_fx = (w_pw @ t2) * s3 + t3                         # (C_OUT,)
    # BN_r -> strided 1x1 (+bias)   ==   (.) @ w_rs + b_rs
    w_rs = sr[:, None] * w_res.T                         # (C_IN, C_OUT)
    b_rs = w_res @ tr + raw["b_res"]                     # (C_OUT,)

    # fx rows of the block weight: K index = (kh*F_W + kw)*C_IN + c,
    #   value = s1[c] * w_dw[c, kh, kw] * w_fx[c, co]   (BN1 scale folded here)
    w_fx_blk = jnp.einsum("c,ckl,cn->nklc", s1, w_dw, w_fx)   # (C_OUT,F_H,F_W,C_IN)

    # residual rows: the strided residual tap == depthwise tap (PAD_T, PAD_L),
    # so fold w_rs onto those K columns (zeros elsewhere).
    w_rs_blk = jnp.zeros((C_OUT, F_H, F_W, C_IN), jnp.float32)
    w_rs_blk = w_rs_blk.at[:, PAD_T, PAD_L, :].set(w_rs.T)

    K = F_H * F_W * C_IN
    w_blk = jnp.concatenate(
        [w_fx_blk.reshape(C_OUT, K), w_rs_blk.reshape(C_OUT, K)],
        axis=0).astype(jnp.float32)                      # (2*C_OUT, K)

    # BN1's shift t1 cannot ride through the zero padding inside the block
    # weight; its contribution through the depthwise conv depends only on how
    # many taps fall inside the valid (non-padded) region -> precompute a
    # per-output-position bias map on the host.
    row = jnp.arange(H_OUT)[:, None] * S_H + jnp.arange(F_H)[None, :]  # (H_OUT,F_H)
    col = jnp.arange(W_OUT)[:, None] * S_W + jnp.arange(F_W)[None, :]  # (W_OUT,F_W)
    row_in = ((row >= PAD_T) & (row < PAD_T + H)).astype(jnp.float32)
    col_in = ((col >= PAD_L) & (col < PAD_L + W)).astype(jnp.float32)
    # cnt_w[c, ho, wo] = sum over in-bounds taps of w_dw[c, kh, kw]
    cnt_w = jnp.einsum("ckl,hk,wl->chw", w_dw, row_in, col_in)
    bmap_fx = jnp.einsum("cn,c,chw->nhw", w_fx, t1, cnt_w) + b_fx[:, None, None]

    bias_fx = jnp.tile(bmap_fx.reshape(C_OUT, 1, H_OUT * W_OUT),
                       (1, B, 1)).reshape(C_OUT, M)
    bias_rs = jnp.broadcast_to(b_rs[:, None], (C_OUT, M))
    bias = jnp.concatenate([bias_fx, bias_rs], axis=0).astype(jnp.float32)

    return {"w_blk": w_blk, "bias": bias}


def rescnn_block2d_forward(x_nchw, folded, kernel_size, stride):
    """x_nchw: (B, C_in, H, W) -> (B, C_out, H_out, W_out), eval-mode semantics."""
    F_H, F_W = kernel_size
    S_H, S_W = stride
    B, C_IN, H, W = x_nchw.shape
    C_OUT = folded["bias"].shape[0] // 2

    PAD_T, PAD_L = F_H // 2, F_W - 1
    HP, WP = H + 2 * PAD_T, W + PAD_L
    H_OUT = (HP - F_H) // S_H + 1
    W_OUT = (WP - F_W) // S_W + 1
    # residual strided 1x1 conv must produce the same spatial shape
    assert (H - 1) // S_H + 1 == H_OUT and (W - 1) // S_W + 1 == W_OUT
    M = B * H_OUT * W_OUT
    H_HALF = -(-HP // S_H)      # ceil(HP / S_H)
    W_HALF = -(-WP // S_W)      # ceil(WP / S_W)

    kernel = _make_kernel(B, C_IN, C_OUT, F_H, F_W, S_H, S_W, H_OUT, W_OUT)

    # ---- layout plumbing on the host (no compute hoisted): channels-last,
    #      zero pad, then split into S_H*S_W stride-phase planes so every
    #      in-kernel im2col tap is a contiguous unit-stride slice. ------------
    x_nhwc = jnp.transpose(x_nchw, (0, 2, 3, 1)).astype(jnp.float32)
    xpad = jnp.pad(x_nhwc, ((0, 0),
                            (PAD_T, S_H * H_HALF - H - PAD_T),
                            (PAD_L, S_W * W_HALF - W - PAD_L),
                            (0, 0)))
    xph = xpad.reshape(B, H_HALF, S_H, W_HALF, S_W, C_IN)
    xph = jnp.transpose(xph, (2, 4, 0, 1, 3, 5)).reshape(
        S_H * S_W, B, H_HALF, W_HALF, C_IN)

    vmem = pl.BlockSpec(memory_space=pltpu.MemorySpace.VMEM)
    # Grid-less single invocation (problem is a few hundred KiB); see the
    # production TODO in the header for the gridded / megacore variant.
    out_t = pl.pallas_call(
        kernel,
        out_shape=jax.ShapeDtypeStruct((C_OUT, M), jnp.float32),
        in_specs=[vmem, vmem, vmem],
        out_specs=vmem,
    )(xph, folded["w_blk"], folded["bias"])

    # (C_OUT, B*H_OUT*W_OUT) -> (B, C_OUT, H_OUT, W_OUT): leading-dim permute.
    return jnp.transpose(out_t.reshape(C_OUT, B, H_OUT, W_OUT), (1, 0, 2, 3))


if __name__ == "__main__":
    # Module config: ResCNNBlock2D(in_feat=4, out_feat=8, kernel_size=(3,3),
    #                              stride=(2,2), dropout=0), eval mode.
    B, C_IN, H, W = 2, 4, 16, 16
    C_OUT = 8
    kernel_size = (3, 3)
    stride = (2, 2)
    F_H, F_W = kernel_size
    eps = 1e-5

    key = jax.random.PRNGKey(0)
    keys = jax.random.split(key, 22)

    def kaiming_uniform(k, shape, fan_in):
        bound = (6.0 / fan_in) ** 0.5
        return jax.random.uniform(k, shape, jnp.float32, -bound, bound)

    def bn_fold(kg, kb, km, kv, c):
        gamma = 1.0 + 0.1 * jax.random.normal(kg, (c,), jnp.float32)
        beta = 0.1 * jax.random.normal(kb, (c,), jnp.float32)
        mean = 0.1 * jax.random.normal(km, (c,), jnp.float32)
        var = 1.0 + 0.1 * jax.random.uniform(kv, (c,), jnp.float32)
        scale = gamma * lax.rsqrt(var + eps)
        shift = beta - mean * scale
        return scale, shift

    # BatchNorm params (folded to per-channel affine, eval mode)
    s1, t1 = bn_fold(keys[0], keys[1], keys[2], keys[3], C_IN)
    s2, t2 = bn_fold(keys[4], keys[5], keys[6], keys[7], C_IN)
    s3, t3 = bn_fold(keys[8], keys[9], keys[10], keys[11], C_OUT)
    sr, tr = bn_fold(keys[12], keys[13], keys[14], keys[15], C_IN)

    # Conv weights, PyTorch layouts
    w_dw_t = kaiming_uniform(keys[16], (C_IN, 1, F_H, F_W), F_H * F_W)   # depthwise
    w_pw_t = kaiming_uniform(keys[17], (C_OUT, C_IN, 1, 1), C_IN)        # pointwise
    w_res_t = kaiming_uniform(keys[18], (C_OUT, C_IN, 1, 1), C_IN)       # residual
    b_res = jax.random.uniform(keys[19], (C_OUT,), jnp.float32,
                               -(1.0 / C_IN) ** 0.5, (1.0 / C_IN) ** 0.5)

    raw = {"s1": s1, "t1": t1, "s2": s2, "t2": t2, "s3": s3, "t3": t3,
           "sr": sr, "tr": tr, "w_dw": w_dw_t, "w_pw": w_pw_t,
           "w_res": w_res_t, "b_res": b_res}
    folded = fold_params(raw, kernel_size, stride, (B, C_IN, H, W))

    x = jax.random.normal(keys[20], (B, C_IN, H, W), jnp.float32)

    out = rescnn_block2d_forward(x, folded, kernel_size, stride)
    out = jax.block_until_ready(out)

    # ---- pure-JAX reference (same eval-mode math, un-folded params) ---------
    def ref_forward(xin):
        dn = ("NCHW", "OIHW", "NCHW")

        def bn(h, s, t):
            return h * s[None, :, None, None] + t[None, :, None, None]

        h = bn(xin, s1, t1)
        h = jnp.pad(h, ((0, 0), (0, 0), (F_H // 2, F_H // 2), (F_W - 1, 0)))
        h = lax.conv_general_dilated(h, w_dw_t, stride, "VALID",
                                     dimension_numbers=dn,
                                     feature_group_count=C_IN)
        h = bn(h, s2, t2)
        h = lax.conv_general_dilated(h, w_pw_t, (1, 1), "VALID",
                                     dimension_numbers=dn)
        fx = jnp.maximum(bn(h, s3, t3), 0.0)
        r = bn(xin, sr, tr)
        r = lax.conv_general_dilated(r, w_res_t, stride, "VALID",
                                     dimension_numbers=dn)
        r = r + b_res[None, :, None, None]
        return fx + r

    ref = ref_forward(x)
    assert out.shape == ref.shape, (out.shape, ref.shape)
    max_err = float(jnp.max(jnp.abs(out - ref)))
    if max_err > 1e-3:
        raise AssertionError(f"Pallas kernel mismatch vs reference: {max_err}")

    print("KERNEL_OK")
</pallas_src>

<mosaic_0001>
module attributes {stable_mosaic.version = 11 : i64} {
  func.func @kernel(%arg0: memref<4x2x9x9x4xf32, #tpu.memory_space<vmem>>, %arg1: memref<16x36xf32, #tpu.memory_space<vmem>>, %arg2: memref<16x128xf32, #tpu.memory_space<vmem>>, %arg3: memref<8x128xf32, #tpu.memory_space<vmem>>) attributes {dimension_semantics = [], scalar_prefetch = 0 : i64, scratch_operands = 0 : i64, tpu.core_type = #tpu.core_type<tc>} {
    %c0 = arith.constant 0 : index
    %c0_0 = arith.constant 0 : index
    %c0_1 = arith.constant 0 : index
    %c0_2 = arith.constant 0 : index
    %c0_3 = arith.constant 0 : index
    %0 = vector.load %arg0[%c0, %c0_0, %c0_1, %c0_2, %c0_3] : memref<4x2x9x9x4xf32, #tpu.memory_space<vmem>>, vector<1x2x8x8x4xf32>
    %1 = vector.shape_cast %0 : vector<1x2x8x8x4xf32> to vector<2x8x8x4xf32>
    %2 = vector.shape_cast %1 : vector<2x8x8x4xf32> to vector<128x4xf32>
    %c1 = arith.constant 1 : index
    %c0_4 = arith.constant 0 : index
    %c0_5 = arith.constant 0 : index
    %c0_6 = arith.constant 0 : index
    %c0_7 = arith.constant 0 : index
    %3 = vector.load %arg0[%c1, %c0_4, %c0_5, %c0_6, %c0_7] : memref<4x2x9x9x4xf32, #tpu.memory_space<vmem>>, vector<1x2x8x8x4xf32>
    %4 = vector.shape_cast %3 : vector<1x2x8x8x4xf32> to vector<2x8x8x4xf32>
    %5 = vector.shape_cast %4 : vector<2x8x8x4xf32> to vector<128x4xf32>
    %c0_8 = arith.constant 0 : index
    %c0_9 = arith.constant 0 : index
    %c0_10 = arith.constant 0 : index
    %c1_11 = arith.constant 1 : index
    %c0_12 = arith.constant 0 : index
    %6 = vector.load %arg0[%c0_8, %c0_9, %c0_10, %c1_11, %c0_12] : memref<4x2x9x9x4xf32, #tpu.memory_space<vmem>>, vector<1x2x8x8x4xf32>
    %7 = vector.shape_cast %6 : vector<1x2x8x8x4xf32> to vector<2x8x8x4xf32>
    %8 = vector.shape_cast %7 : vector<2x8x8x4xf32> to vector<128x4xf32>
    %c2 = arith.constant 2 : index
    %c0_13 = arith.constant 0 : index
    %c0_14 = arith.constant 0 : index
    %c0_15 = arith.constant 0 : index
    %c0_16 = arith.constant 0 : index
    %9 = vector.load %arg0[%c2, %c0_13, %c0_14, %c0_15, %c0_16] : memref<4x2x9x9x4xf32, #tpu.memory_space<vmem>>, vector<1x2x8x8x4xf32>
    %10 = vector.shape_cast %9 : vector<1x2x8x8x4xf32> to vector<2x8x8x4xf32>
    %11 = vector.shape_cast %10 : vector<2x8x8x4xf32> to vector<128x4xf32>
    %c3 = arith.constant 3 : index
    %c0_17 = arith.constant 0 : index
    %c0_18 = arith.constant 0 : index
    %c0_19 = arith.constant 0 : index
    %c0_20 = arith.constant 0 : index
    %12 = vector.load %arg0[%c3, %c0_17, %c0_18, %c0_19, %c0_20] : memref<4x2x9x9x4xf32, #tpu.memory_space<vmem>>, vector<1x2x8x8x4xf32>
    %13 = vector.shape_cast %12 : vector<1x2x8x8x4xf32> to vector<2x8x8x4xf32>
    %14 = vector.shape_cast %13 : vector<2x8x8x4xf32> to vector<128x4xf32>
    %c2_21 = arith.constant 2 : index
    %c0_22 = arith.constant 0 : index
    %c0_23 = arith.constant 0 : index
    %c1_24 = arith.constant 1 : index
    %c0_25 = arith.constant 0 : index
    %15 = vector.load %arg0[%c2_21, %c0_22, %c0_23, %c1_24, %c0_25] : memref<4x2x9x9x4xf32, #tpu.memory_space<vmem>>, vector<1x2x8x8x4xf32>
    %16 = vector.shape_cast %15 : vector<1x2x8x8x4xf32> to vector<2x8x8x4xf32>
    %17 = vector.shape_cast %16 : vector<2x8x8x4xf32> to vector<128x4xf32>
    %c0_26 = arith.constant 0 : index
    %c0_27 = arith.constant 0 : index
    %c1_28 = arith.constant 1 : index
    %c0_29 = arith.constant 0 : index
    %c0_30 = arith.constant 0 : index
    %18 = vector.load %arg0[%c0_26, %c0_27, %c1_28, %c0_29, %c0_30] : memref<4x2x9x9x4xf32, #tpu.memory_space<vmem>>, vector<1x2x8x8x4xf32>
    %19 = vector.shape_cast %18 : vector<1x2x8x8x4xf32> to vector<2x8x8x4xf32>
    %20 = vector.shape_cast %19 : vector<2x8x8x4xf32> to vector<128x4xf32>
    %c1_31 = arith.constant 1 : index
    %c0_32 = arith.constant 0 : index
    %c1_33 = arith.constant 1 : index
    %c0_34 = arith.constant 0 : index
    %c0_35 = arith.constant 0 : index
    %21 = vector.load %arg0[%c1_31, %c0_32, %c1_33, %c0_34, %c0_35] : memref<4x2x9x9x4xf32, #tpu.memory_space<vmem>>, vector<1x2x8x8x4xf32>
    %22 = vector.shape_cast %21 : vector<1x2x8x8x4xf32> to vector<2x8x8x4xf32>
    %23 = vector.shape_cast %22 : vector<2x8x8x4xf32> to vector<128x4xf32>
    %c0_36 = arith.constant 0 : index
    %c0_37 = arith.constant 0 : index
    %c1_38 = arith.constant 1 : index
    %c1_39 = arith.constant 1 : index
    %c0_40 = arith.constant 0 : index
    %24 = vector.load %arg0[%c0_36, %c0_37, %c1_38, %c1_39, %c0_40] : memref<4x2x9x9x4xf32, #tpu.memory_space<vmem>>, vector<1x2x8x8x4xf32>
    %25 = vector.shape_cast %24 : vector<1x2x8x8x4xf32> to vector<2x8x8x4xf32>
    %26 = vector.shape_cast %25 : vector<2x8x8x4xf32> to vector<128x4xf32>
    %27 = tpu.concatenate %2, %5, %8, %11, %14, %17, %20, %23, %26 in 1 : vector<128x4xf32>, vector<128x4xf32>, vector<128x4xf32>, vector<128x4xf32>, vector<128x4xf32>, vector<128x4xf32>, vector<128x4xf32>, vector<128x4xf32>, vector<128x4xf32> -> vector<128x36xf32>
    %c0_41 = arith.constant 0 : index
    %c0_42 = arith.constant 0 : index
    %28 = vector.load %arg1[%c0_41, %c0_42] : memref<16x36xf32, #tpu.memory_space<vmem>>, vector<16x36xf32>
    %cst = arith.constant dense<0.000000e+00> : vector<16x128xf32>
    %29 = tpu.matmul %28, %27, %cst {dimension_numbers = #tpu.dot_dimension_numbers<[1], [1], [0], [0], [0, 0, 1, 0], [], []>} : vector<16x36xf32>, vector<128x36xf32>, vector<16x128xf32> -> vector<16x128xf32>
    %c0_43 = arith.constant 0 : index
    %c0_44 = arith.constant 0 : index
    %30 = vector.load %arg2[%c0_43, %c0_44] : memref<16x128xf32, #tpu.memory_space<vmem>>, vector<16x128xf32>
    %31 = arith.addf %29, %30 : vector<16x128xf32>
    %32 = vector.extract_strided_slice %31 {offsets = [0, 0], sizes = [8, 128], strides = [1, 1]} : vector<16x128xf32> to vector<8x128xf32>
    %cst_45 = arith.constant 0.000000e+00 : f32
    %33 = vector.broadcast %cst_45 : f32 to vector<8x128xf32>
    %34 = arith.maximumf %32, %33 : vector<8x128xf32>
    %35 = vector.extract_strided_slice %31 {offsets = [8, 0], sizes = [8, 128], strides = [1, 1]} : vector<16x128xf32> to vector<8x128xf32>
    %36 = arith.addf %34, %35 : vector<8x128xf32>
    %c0_46 = arith.constant 0 : index
    %c0_47 = arith.constant 0 : index
    %37 = vector.load %arg3[%c0_46, %c0_47] : memref<8x128xf32, #tpu.memory_space<vmem>>, vector<8x128xf32>
    tpu.vector_store %arg3[%c0_46, %c0_47], %36 {strides = array<i32>} : memref<8x128xf32, #tpu.memory_space<vmem>>, vector<8x128xf32>,
    return
  }
}

</mosaic_0001>

<bundles_post_ra>
// kernel: tpu_custom_call.1
= control target key start
LH: loop header
LB: loop body
LE: loop exit
PB: predicated region body
PF: predicated region fallthrough
CT: control target
= control target key end

     0   :  { %s1094_s18 = smov 4   ;;  %s1986_s0 = inlined_call_operand.vmem [shape: f32[4,2,9,9,4], index: 0, kind: input, shape index: {}]   ;;  %s1987_s1 = inlined_call_operand.vmem [shape: f32[16,36], index: 1, kind: input, shape index: {}]   ;;  %s1988_s2 = inlined_call_operand.vmem [shape: f32[16,128], index: 2, kind: input, shape index: {}]   ;;  %s1989_s3 = inlined_call_operand.hbm [shape: f32[8,128], index: 3, kind: output, shape index: {}]  }
   0x1   :  { %v1126_v0 = vld [vmem:[%s1986_s0 + $0x160] sm:$0xff] }
   0x2   :  { %v1131_v1 = vld [vmem:[%s1986_s0 + $0x140] sm:$0xff]  ;;  %188 = vrot.lane.b32.xlu2 %v1126_v0, %s1094_s18 }
   0x3   :  { %v913_v2 = vld [vmem:[%s1986_s0 + $0x120] sm:$0xff]  ;;  %184 = vrot.lane.b32.xlu1 %v1131_v1, %s1094_s18 }
   0x4   :  { %180 = vrot.lane.b32.xlu0 %v913_v2, %s1094_s18 }
   0x5   :  { %8 = vsyncpa [#allocation3], 0  ;;  %v1144_v3 = vld [vmem:[%s1986_s0 + $0x170] sm:$0xff]  ;;  %v1173_v8 = vld [vmem:[%s1986_s0 + $0x180] sm:$0xff]  ;;  %s1095_s23 = smov 8   ;;  %s1096_s28 = smov 12  }
   0x6   :  { %v1149_v4 = vld [vmem:[%s1986_s0 + $0x150] sm:$0xff]  ;;  %v1183_v9 = vld [vmem:[%s1986_s0 + $0x1e0] sm:$0xff]  ;;  %vm676_vm0 = vcmask 31744   ;;  %s1097_s13 = smov 24   ;;  %s1098_s14 = smov 20   ;;  %vm693_vm1 = vcmask 64512  }
   0x7   :  { %v1154_v5 = vld [vmem:[%s1986_s0 + $0x130] sm:$0xff]  ;;  %v1193_v11 = vld [vmem:[%s1986_s0 + $0x1c0] sm:$0xff]  ;;  %s1099_s15 = smov 16   ;;  %s1100_s26 = smov 32   ;;  %vm710_vm2 = vcmask 97280   ;;  %vm727_vm3 = vcmask 130048  }
   0x8   :  { %v921_v6 = vld [vmem:[%s1986_s0 + $0x1b0] sm:$0xff]  ;;  %v1209_v13 = vld [vmem:[%s1986_s0 + $0x200] sm:$0xff]  ;;  %s1101_s27 = smov 28   ;;  %vm744_vm4 = vcmask 162816   ;;  %vm761_vm5 = vcmask 195584   ;;  %vm778_vm6 = vcmask 228352  }
   0x9   :  { %v1168_v7 = vld [vmem:[%s1986_s0 + $0x190] sm:$0xff]  ;;  %v48_v16 = vld [vmem:[%s1986_s0 + $0x1] sm:$0xff]  ;;  %vm795_vm7 = vcmask 261120   ;;  %vm816_vm8 = vcmask 293888   ;;  %s1102_s5 = smov [#allocation2]   ;;  %s904_s7 = sshll.u32 %s1989_s3, 4  ;;  %s905_s7 = int_to_ptr.hbm [resolvable:$true] %s904_s7 }
   0xa   :  { %190 = vrot.lane.b32.xlu2 %v1144_v3, %s1094_s18  ;;  %v1188_v10 = vld [vmem:[%s1986_s0 + $0x1d0] sm:$0xff]  ;;  %v1233_v17 = vld [vmem:[%s1986_s0 + $0x220] sm:$0xff]  ;;  %s902_s6 = sshll.u32 %s1102_s5, 4  ;;  %s903_s6 = int_to_ptr.vmem [resolvable:$true] %s902_s6 }
   0xb   :  { %186 = vrot.lane.b32.xlu1 %v1149_v4, %s1094_s18  ;;  %v1204_v12 = vld [vmem:[%s1986_s0 + $0x210] sm:$0xff]  ;;  %v1243_v18 = vld [vmem:[%s1986_s0 + $0x41] sm:$0xff] }
   0xc   :  { %182 = vrot.lane.b32.xlu0 %v1154_v5, %s1094_s18  ;;  %v1214_v14 = vld [vmem:[%s1986_s0 + $0x1f0] sm:$0xff]  ;;  %v1253_v20 = vld [vmem:[%s1986_s0 + $0x21] sm:$0xff] }
   0xd   :  { %v1225_v15 = vld [vmem:[%s1986_s0 + $0x11] sm:$0xff]  ;;  %v1269_v22 = vld [vmem:[%s1986_s0 + $0x61] sm:$0xff] }
   0xe   :  { %v1248_v19 = vld [vmem:[%s1986_s0 + $0x31] sm:$0xff]  ;;  %v1290_v25 = vld [vmem:[%s1986_s0 + $0xa1] sm:$0xff] }
   0xf   :  { %v1264_v21 = vld [vmem:[%s1986_s0 + $0x71] sm:$0xff]  ;;  %v1303_v27 = vld [vmem:[%s1986_s0 + $0xe1] sm:$0xff] }
  0x10   :  { %v1274_v23 = vld [vmem:[%s1986_s0 + $0x51] sm:$0xff]  ;;  %v1313_v29 = vld [vmem:[%s1986_s0 + $0xc1] sm:$0xff] }
  0x11   :  { %v1285_v24 = vld [vmem:[%s1986_s0 + $0xb1] sm:$0xff]  ;;  %v929_v30 = vld [vmem:[%s1986_s0 + $0x240] sm:$0xff] }
  0x12   :  { %196 = vrot.lane.b32.xlu2 %v921_v6, %s1094_s18  ;;  %v56_v26 = vld [vmem:[%s1986_s0 + $0x91] sm:$0xff]  ;;  %v1327_v31 = vld [vmem:[%s1986_s0 + $0x101] sm:$0xff] }
  0x13   :  { %194 = vrot.lane.b32.xlu1 %v1168_v7, %s1094_s18  ;;  %v1308_v28 = vld [vmem:[%s1986_s0 + $0xd1] sm:$0xff]  ;;  %v931_v34 = vld [vmem:[%s1986_s0 + $0x260] sm:$0xff] }
  0x14   :  { %192 = vrot.lane.b32.xlu0 %v1173_v8, %s1094_s18  ;;  %v1332_v32 = vld [vmem:[%s1986_s0 + $0xf1] sm:$0xff]  ;;  %v935_v37 = vld [vmem:[%s1986_s0 + $0x2a0] sm:$0xff] }
  0x15   :  { %v932_v33 = vld [vmem:[%s1986_s0 + $0x270] sm:$0xff]  ;;  %v933_v39 = vld [vmem:[%s1986_s0 + $0x280] sm:$0xff] }
  0x16   :  { %v930_v35 = vld [vmem:[%s1986_s0 + $0x250] sm:$0xff]  ;;  %v938_v41 = vld [vmem:[%s1986_s0 + $0x2e0] sm:$0xff] }
  0x17   :  { %v934_v38 = vld [vmem:[%s1986_s0 + $0x290] sm:$0xff]  ;;  %v940_v46 = vld [vmem:[%s1986_s0 + $0x300] sm:$0xff] }
  0x18   :  { %v937_v42 = vld [vmem:[%s1986_s0 + $0x2d0] sm:$0xff]  ;;  %v944_v51 = vld [vmem:[%s1986_s0 + $0x340] sm:$0xff] }
  0x19   :  { %v936_v43 = vld [vmem:[%s1986_s0 + $0x2b0] sm:$0xff]  ;;  %v942_v53 = vld [vmem:[%s1986_s0 + $0x320] sm:$0xff] }
  0x1a   :  { %202 = vrot.lane.b32.xlu2 %v1183_v9, %s1094_s18  ;;  %v941_v45 = vld [vmem:[%s1986_s0 + $0x310] sm:$0xff]  ;;  %v976_v60 = vld [vmem:[%s1986_s0 + $0x341] sm:$0xff] }
  0x1b   :  { %200 = vrot.lane.b32.xlu1 %v1188_v10, %s1094_s18  ;;  %v939_v47 = vld [vmem:[%s1986_s0 + $0x2f0] sm:$0xff]  ;;  %v960_v61 = vld [vmem:[%s1986_s0 + $0x460] sm:$0xff] }
  0x1c   :  { %198 = vrot.lane.b32.xlu0 %v1193_v11, %s1094_s18  ;;  %v943_v52 = vld [vmem:[%s1986_s0 + $0x330] sm:$0xff] }
  0x1d   :  { %v1411_v54 = vld [vmem:[%s1986_s0 + $0xf0] sm:$0xff] }
  0x1e   :  { %v992_v59 = vld [vmem:[%s1986_s0 + $0x110] sm:$0xff] }
  0x1f   :  { %v1432_v62 = vld [vmem:[%s1986_s0 + $0x10] sm:$0xff] }
  0x22   :  { %208 = vrot.lane.b32.xlu2 %v1204_v12, %s1094_s18 }
  0x23   :  { %206 = vrot.lane.b32.xlu1 %v1209_v13, %s1094_s18 }
  0x24   :  { %204 = vrot.lane.b32.xlu0 %v1214_v14, %s1094_s18 }
  0x2a   :  { %246 = vrot.lane.b32.xlu2 %v1225_v15, %s1095_s23 }
  0x2b   :  { %244 = vrot.lane.b32.xlu1 %v48_v16, %s1095_s23 }
  0x2c   :  { %210 = vrot.lane.b32.xlu0 %v1233_v17, %s1094_s18 }
  0x32   :  { %252 = vrot.lane.b32.xlu2 %v1243_v18, %s1095_s23 }
  0x33   :  { %250 = vrot.lane.b32.xlu1 %v1248_v19, %s1095_s23 }
  0x34   :  { %248 = vrot.lane.b32.xlu0 %v1253_v20, %s1095_s23 }
  0x3a   :  { %258 = vrot.lane.b32.xlu2 %v1264_v21, %s1095_s23 }
  0x3b   :  { %256 = vrot.lane.b32.xlu1 %v1269_v22, %s1095_s23 }
  0x3c   :  { %254 = vrot.lane.b32.xlu0 %v1274_v23, %s1095_s23 }
  0x42   :  { %264 = vrot.lane.b32.xlu2 %v1285_v24, %s1095_s23 }
  0x43   :  { %262 = vrot.lane.b32.xlu1 %v1290_v25, %s1095_s23 }
  0x44   :  { %260 = vrot.lane.b32.xlu0 %v56_v26, %s1095_s23 }
  0x4a   :  { %270 = vrot.lane.b32.xlu2 %v1303_v27, %s1095_s23 }
  0x4b   :  { %268 = vrot.lane.b32.xlu1 %v1308_v28, %s1095_s23 }
  0x4c   :  { %266 = vrot.lane.b32.xlu0 %v1313_v29, %s1095_s23 }
  0x52   :  { %308 = vrot.lane.b32.xlu2 %v929_v30, %s1096_s28  ;;  %v1024_v30 = vld [vmem:[%s1986_s0 + $0x111] sm:$0xff] }
  0x53   :  { %274 = vrot.lane.b32.xlu1 %v1327_v31, %s1095_s23 }
  0x54   :  { %272 = vrot.lane.b32.xlu0 %v1332_v32, %s1095_s23 }
  0x5a   :  { %314 = vrot.lane.b32.xlu2 %v932_v33, %s1096_s28  ;;  %v959_v33 = vld [vmem:[%s1986_s0 + $0x450] sm:$0xff] }
  0x5b   :  { %312 = vrot.lane.b32.xlu1 %v931_v34, %s1096_s28  ;;  %v1008_v34 = vld [vmem:[%s1986_s0 + $0x230] sm:$0xff] }
  0x5c   :  { %310 = vrot.lane.b32.xlu0 %v930_v35, %s1096_s28  ;;  %v189_v36 = vpop.permute.xlu2 %188  ;;  %v1456_v35 = vld [vmem:[%s1986_s0 + $0x40] sm:$0xff] }
  0x62   :  { %320 = vrot.lane.b32.xlu2 %v935_v37, %s1096_s28  ;;  %v681_v37 = vsel %vm676_vm0, %v1456_v35, %v189_v36  ;;  %v28_v36 = vld [vmem:[%s1986_s0 + $0xe0] sm:$0xff] }
  0x63   :  { %318 = vrot.lane.b32.xlu1 %v934_v38, %s1096_s28 }
  0x64   :  { %316 = vrot.lane.b32.xlu0 %v933_v39, %s1096_s28  ;;  %v1363_v40 = vpop.permute.xlu2 %190 }
  0x6a   :  { %326 = vrot.lane.b32.xlu2 %v938_v41, %s1096_s28 }
  0x6b   :  { %324 = vrot.lane.b32.xlu1 %v937_v42, %s1096_s28 }
  0x6c   :  { %322 = vrot.lane.b32.xlu0 %v936_v43, %s1096_s28  ;;  %v1377_v44 = vpop.permute.xlu2 %196  ;;  %v991_v43 = vld [vmem:[%s1986_s0 + $0x100] sm:$0xff] }
  0x72   :  { %332 = vrot.lane.b32.xlu2 %v941_v45, %s1096_s28  ;;  %v975_v45 = vld [vmem:[%s1986_s0 + $0x331] sm:$0xff] }
  0x73   :  { %330 = vrot.lane.b32.xlu1 %v940_v46, %s1096_s28  ;;  %v1477_v46 = vld [vmem:[%s1986_s0 + $0x70] sm:$0xff] }
  0x74   :  { %328 = vrot.lane.b32.xlu0 %v939_v47, %s1096_s28  ;;  %v1391_v48 = vpop.permute.xlu2 %202  ;;  %v1489_v47 = vld [vmem:[%s1986_s0 + $0xd0] sm:$0xff] }
  0x75   :  { %v1393_v49 = vpop.permute.xlu1 %184 }
  0x76   :  { %v1395_v50 = vpop.permute.xlu0 %180 }
  0x7a   :  { %338 = vrot.lane.b32.xlu2 %v944_v51, %s1096_s28 }
  0x7b   :  { %336 = vrot.lane.b32.xlu1 %v943_v52, %s1096_s28 }
  0x7c   :  { %334 = vrot.lane.b32.xlu0 %v942_v53, %s1096_s28  ;;  %v209_v55 = vpop.permute.xlu2 %208 }
  0x7d   :  { %v1414_v56 = vpop.permute.xlu1 %186  ;;  %v1418_v57 = vsel %vm676_vm0, %v1411_v54, %v209_v55 }
  0x7e   :  { %v183_v58 = vpop.permute.xlu0 %182 }
  0x7f   :  { %v678_v63 = vsel %vm676_vm0, %v1432_v62, %v183_v58 }
  0x82   :  { %530 = vrot.lane.b32.xlu2 %v992_v59, %s1097_s13 }
  0x83   :  { %466 = vrot.lane.b32.xlu1 %v976_v60, %s1098_s14  ;;  %v974_v60 = vld [vmem:[%s1986_s0 + $0x321] sm:$0xff] }
  0x84   :  { %402 = vrot.lane.b32.xlu0 %v960_v61, %s1099_s15  ;;  %v247_v2 = vpop.permute.xlu2 %246  ;;  %v958_v61 = vld [vmem:[%s1986_s0 + $0x440] sm:$0xff] }
  0x85   :  { %v195_v6 = vpop.permute.xlu1 %194  ;;  %v1440_v16 = vsel %vm693_vm1, %v678_v63, %v247_v2  ;;  %v15_v63 = vld [vmem:[%s1986_s0] sm:$0xff]  ;;  %v1513_v2 = vld [vmem:[%s1986_s0 + $0xb0] sm:$0xff] }
  0x86   :  { %v1442_v26 = vpop.permute.xlu0 %192  ;;  %v684_v51 = vsel %vm676_vm0, %v1477_v46, %v195_v6  ;;  %v677_v6 = vsel %vm676_vm0, %v15_v63, %v1395_v50  ;;  %v1536_v50 = vld [vmem:[%s1986_s0 + $0x30] sm:$0xff] }
  0x8a   :  { %658 = vrot.lane.b32.xlu2 %v1024_v30, %s1100_s26 }
  0x8b   :  { %400 = vrot.lane.b32.xlu1 %v959_v33, %s1099_s15 }
  0x8c   :  { %594 = vrot.lane.b32.xlu0 %v1008_v34, %s1101_s27  ;;  %v253_v38 = vpop.permute.xlu2 %252 }
  0x8d   :  { %v201_v39 = vpop.permute.xlu1 %200  ;;  %v1464_v41 = vsel %vm693_vm1, %v681_v37, %v253_v38 }
  0x8e   :  { %v1466_v42 = vpop.permute.xlu0 %198  ;;  %v687_v30 = vsel %vm676_vm0, %v1513_v2, %v201_v39  ;;  %v1541_v39 = vld [vmem:[%s1986_s0 + $0x20] sm:$0xff] }
  0x92   :  { %592 = vrot.lane.b32.xlu2 %v1233_v17, %s1101_s27 }
  0x93   :  { %528 = vrot.lane.b32.xlu1 %v991_v43, %s1097_s13 }
  0x94   :  { %464 = vrot.lane.b32.xlu0 %v975_v45, %s1098_s14  ;;  %v259_v52 = vpop.permute.xlu2 %258 }
  0x95   :  { %v207_v53 = vpop.permute.xlu1 %206  ;;  %v1494_v17 = vsel %vm693_vm1, %v684_v51, %v259_v52 }
  0x96   :  { %v690_v55 = vsel %vm676_vm0, %v28_v36, %v207_v53  ;;  %v205_v58 = vpop.permute.xlu0 %204 }
  0x97   :  { %v1499_v59 = vsel %vm676_vm0, %v1489_v47, %v205_v58  ;;  %v679_v58 = vsel %vm676_vm0, %v1541_v39, %v1393_v49  ;;  %v1570_v49 = vld [vmem:[%s1986_s0 + $0x50] sm:$0xff] }
  0x9a   :  { %462 = vrot.lane.b32.xlu2 %v974_v60, %s1098_s14 }
  0x9b   :  { %656 = vrot.lane.b32.xlu1 %v1327_v31, %s1100_s26  ;;  %v957_v31 = vld [vmem:[%s1986_s0 + $0x430] sm:$0xff] }
  0x9c   :  { %398 = vrot.lane.b32.xlu0 %v958_v61, %s1099_s15  ;;  %v265_v33 = vpop.permute.xlu2 %264 }
  0x9d   :  { %v245_v34 = vpop.permute.xlu1 %244  ;;  %v1524_v37 = vsel %vm693_vm1, %v687_v30, %v265_v33  ;;  %v682_v33 = vsel %vm676_vm0, %v1570_v49, %v1363_v40  ;;  %v23_v40 = vld [vmem:[%s1986_s0 + $0x90] sm:$0xff] }
  0x9e   :  { %v694_v38 = vsel %vm693_vm1, %v677_v6, %v245_v34  ;;  %v211_v45 = vpop.permute.xlu0 %210 }
  0x9f   :  { %v1528_v51 = vsel %vm676_vm0, %v991_v43, %v211_v45  ;;  %v680_v43 = vsel %vm676_vm0, %v1536_v50, %v1414_v56  ;;  %v1565_v56 = vld [vmem:[%s1986_s0 + $0x60] sm:$0xff] }
  0xa2   :  { %396 = vrot.lane.b32.xlu2 %v957_v31, %s1099_s15 }
  0xa3   :  { %590 = vrot.lane.b32.xlu1 %v1204_v12, %s1101_s27 }
  0xa4   :  { %526 = vrot.lane.b32.xlu0 %v1411_v54, %s1097_s13  ;;  %v271_v52 = vpop.permute.xlu2 %270  ;;  %v973_v54 = vld [vmem:[%s1986_s0 + $0x311] sm:$0xff] }
  0xa5   :  { %v251_v53 = vpop.permute.xlu1 %250  ;;  %v1555_v60 = vsel %vm693_vm1, %v690_v55, %v271_v52  ;;  %v683_v55 = vsel %vm676_vm0, %v1565_v56, %v1442_v26  ;;  %v1593_v26 = vld [vmem:[%s1986_s0 + $0xa0] sm:$0xff] }
  0xa6   :  { %v697_v61 = vsel %vm693_vm1, %v680_v43, %v251_v53  ;;  %v249_v63 = vpop.permute.xlu0 %248  ;;  %v685_v53 = vsel %vm676_vm0, %v23_v40, %v1377_v44 }
  0xa7   :  { %v696_v12 = vsel %vm693_vm1, %v679_v58, %v249_v63 }
  0xaa   :  { %524 = vrot.lane.b32.xlu2 %v28_v36, %s1097_s13 }
  0xab   :  { %460 = vrot.lane.b32.xlu1 %v973_v54, %s1098_s14 }
  0xac   :  { %654 = vrot.lane.b32.xlu0 %v1332_v32, %s1100_s26  ;;  %v309_v6 = vpop.permute.xlu2 %308  ;;  %v956_v32 = vld [vmem:[%s1986_s0 + $0x420] sm:$0xff] }
  0xad   :  { %v257_v30 = vpop.permute.xlu1 %256  ;;  %v1583_v34 = vsel %vm710_vm2, %v694_v38, %v309_v6  ;;  %v686_v38 = vsel %vm676_vm0, %v1593_v26, %v1466_v42  ;;  %v26_v42 = vld [vmem:[%s1986_s0 + $0xc0] sm:$0xff] }
  0xae   :  { %v700_v36 = vsel %vm693_vm1, %v683_v55, %v257_v30  ;;  %v255_v45 = vpop.permute.xlu0 %254  ;;  %v688_v55 = vsel %vm676_vm0, %v26_v42, %v1391_v48 }
  0xaf   :  { %v699_v31 = vsel %vm693_vm1, %v682_v33, %v255_v45  ;;  %v955_v45 = vld [vmem:[%s1986_s0 + $0x410] sm:$0xff] }
  0xb2   :  { %652 = vrot.lane.b32.xlu2 %v1303_v27, %s1100_s26 }
  0xb3   :  { %394 = vrot.lane.b32.xlu1 %v956_v32, %s1099_s15 }
  0xb4   :  { %588 = vrot.lane.b32.xlu0 %v1209_v13, %s1101_s27  ;;  %v315_v43 = vpop.permute.xlu2 %314  ;;  %v972_v13 = vld [vmem:[%s1986_s0 + $0x301] sm:$0xff] }
  0xb5   :  { %v263_v52 = vpop.permute.xlu1 %262  ;;  %v1609_v58 = vsel %vm710_vm2, %v697_v61, %v315_v43 }
  0xb6   :  { %v703_v63 = vsel %vm693_vm1, %v686_v38, %v263_v52  ;;  %v261_v27 = vpop.permute.xlu0 %260  ;;  %v954_v38 = vld [vmem:[%s1986_s0 + $0x400] sm:$0xff] }
  0xb7   :  { %v702_v54 = vsel %vm693_vm1, %v685_v53, %v261_v27 }
  0xba   :  { %586 = vrot.lane.b32.xlu2 %v1214_v14, %s1101_s27 }
  0xbb   :  { %522 = vrot.lane.b32.xlu1 %v1489_v47, %s1097_s13  ;;  %v971_v47 = vld [vmem:[%s1986_s0 + $0x2f1] sm:$0xff] }
  0xbc   :  { %458 = vrot.lane.b32.xlu0 %v972_v13, %s1098_s14  ;;  %v321_v44 = vpop.permute.xlu2 %320 }
  0xbd   :  { %v269_v61 = vpop.permute.xlu1 %268  ;;  %v1627_v6 = vsel %vm710_vm2, %v700_v36, %v321_v44 }
  0xbe   :  { %v1631_v30 = vsel %vm693_vm1, %v1499_v59, %v269_v61  ;;  %v267_v33 = vpop.permute.xlu0 %266  ;;  %v969_v61 = vld [vmem:[%s1986_s0 + $0x2d1] sm:$0xff] }
  0xbf   :  { %v705_v14 = vsel %vm693_vm1, %v688_v55, %v267_v33  ;;  %v968_v33 = vld [vmem:[%s1986_s0 + $0x2b1] sm:$0xff] }
  0xc2   :  { %456 = vrot.lane.b32.xlu2 %v971_v47, %s1098_s14 }
  0xc3   :  { %650 = vrot.lane.b32.xlu1 %v1308_v28, %s1100_s26 }
  0xc4   :  { %392 = vrot.lane.b32.xlu0 %v955_v45, %s1099_s15  ;;  %v327_v48 = vpop.permute.xlu2 %326  ;;  %v1000_v45 = vld [vmem:[%s1986_s0 + $0x1a0] sm:$0xff] }
  0xc5   :  { %v275_v59 = vpop.permute.xlu1 %274  ;;  %v1645_v36 = vsel %vm710_vm2, %v703_v63, %v327_v48  ;;  %v970_v63 = vld [vmem:[%s1986_s0 + $0x2e1] sm:$0xff] }
  0xc6   :  { %v273_v32 = vpop.permute.xlu0 %272  ;;  %v984_v48 = vld [vmem:[%s1986_s0 + $0x80] sm:$0xff] }
  0xc7   :  { %v1649_v40 = vsel %vm693_vm1, %v1418_v57, %v273_v32 }
  0xca   :  { %390 = vrot.lane.b32.xlu2 %v954_v38, %s1099_s15  ;;  %v709_v38 = vsel %vm693_vm1, %v1528_v51, %v275_v59 }
  0xcb   :  { %584 = vrot.lane.b32.xlu1 %v1183_v9, %s1101_s27 }
  0xcc   :  { %520 = vrot.lane.b32.xlu0 %v26_v42, %s1097_s13  ;;  %v1658_v28 = vpop.permute.xlu2 %332  ;;  %v953_v42 = vld [vmem:[%s1986_s0 + $0x3f0] sm:$0xff] }
  0xcd   :  { %v313_v43 = vpop.permute.xlu1 %312 }
  0xce   :  { %v1661_v52 = vsel %vm710_vm2, %v696_v12, %v313_v43  ;;  %v311_v53 = vpop.permute.xlu0 %310 }
  0xcf   :  { %v1665_v57 = vsel %vm710_vm2, %v1440_v16, %v311_v53 }
  0xd2   :  { %518 = vrot.lane.b32.xlu2 %v1513_v2, %s1097_s13 }
  0xd3   :  { %454 = vrot.lane.b32.xlu1 %v970_v63, %s1098_s14 }
  0xd4   :  { %648 = vrot.lane.b32.xlu0 %v1313_v29, %s1100_s26  ;;  %v339_v9 = vpop.permute.xlu2 %338 }
  0xd5   :  { %v319_v12 = vpop.permute.xlu1 %318  ;;  %v726_v53 = vsel %vm710_vm2, %v709_v38, %v339_v9 }
  0xd6   :  { %v1676_v27 = vsel %vm710_vm2, %v699_v31, %v319_v12  ;;  %v317_v13 = vpop.permute.xlu0 %316  ;;  %v967_v12 = vld [vmem:[%s1986_s0 + $0x2a1] sm:$0xff] }
  0xd7   :  { %v1680_v16 = vsel %vm710_vm2, %v1464_v41, %v317_v13  ;;  %v1016_v13 = vld [vmem:[%s1986_s0 + $0x81] sm:$0xff] }
  0xda   :  { %646 = vrot.lane.b32.xlu2 %v1285_v24, %s1100_s26 }
  0xdb   :  { %388 = vrot.lane.b32.xlu1 %v953_v42, %s1099_s15 }
  0xdc   :  { %582 = vrot.lane.b32.xlu0 %v1188_v10, %s1101_s27  ;;  %v531_v29 = vpop.permute.xlu2 %530 }
  0xdd   :  { %v325_v2 = vpop.permute.xlu1 %324 }
  0xde   :  { %v1691_v31 = vsel %vm710_vm2, %v702_v54, %v325_v2  ;;  %v323_v44 = vpop.permute.xlu0 %322 }
  0xdf   :  { %v1695_v41 = vsel %vm710_vm2, %v1494_v17, %v323_v44 }
  0xe2   :  { %580 = vrot.lane.b32.xlu2 %v1193_v11, %s1101_s27  ;;  %v952_v11 = vld [vmem:[%s1986_s0 + $0x3d0] sm:$0xff] }
  0xe3   :  { %516 = vrot.lane.b32.xlu1 %v1593_v26, %s1097_s13 }
  0xe4   :  { %452 = vrot.lane.b32.xlu0 %v969_v61, %s1098_s14  ;;  %v659_v10 = vpop.permute.xlu2 %658 }
  0xe5   :  { %v331_v24 = vpop.permute.xlu1 %330 }
  0xe6   :  { %v1706_v54 = vsel %vm710_vm2, %v705_v14, %v331_v24  ;;  %v329_v55 = vpop.permute.xlu0 %328 }
  0xe7   :  { %v1710_v17 = vsel %vm710_vm2, %v1524_v37, %v329_v55  ;;  %v951_v37 = vld [vmem:[%s1986_s0 + $0x3c0] sm:$0xff] }
  0xea   :  { %450 = vrot.lane.b32.xlu2 %v968_v33, %s1098_s14 }
  0xeb   :  { %644 = vrot.lane.b32.xlu1 %v1290_v25, %s1100_s26 }
  0xec   :  { %386 = vrot.lane.b32.xlu0 %v952_v11, %s1099_s15  ;;  %v593_v26 = vpop.permute.xlu2 %592 }
  0xed   :  { %v337_v14 = vpop.permute.xlu1 %336 }
  0xee   :  { %v1722_v47 = vpop.permute.xlu0 %334 }
  0xef   :  { %v724_v38 = vsel %vm710_vm2, %v1555_v60, %v1722_v47 }
  0xf2   :  { %384 = vrot.lane.b32.xlu2 %v951_v37, %s1099_s15  ;;  %v966_v37 = vld [vmem:[%s1986_s0 + $0x291] sm:$0xff] }
  0xf3   :  { %578 = vrot.lane.b32.xlu1 %v1000_v45, %s1101_s27 }
  0xf4   :  { %514 = vrot.lane.b32.xlu0 %v984_v48, %s1097_s13  ;;  %v463_v25 = vpop.permute.xlu2 %462 }
  0xf5   :  { %v467_v32 = vpop.permute.xlu1 %466 }
  0xf6   :  { %v403_v43 = vpop.permute.xlu0 %402 }
  0xf7   :  { %v743_v63 = vsel %vm727_vm3, %v726_v53, %v403_v43 }
  0xf8   :  { %v760_v42 = vsel %vm744_vm4, %v743_v63, %v467_v32  ;;  %v948_v63 = vld [vmem:[%s1986_s0 + $0x390] sm:$0xff] }
  0xf9   :  { %v777_v2 = vsel %vm761_vm5, %v760_v42, %v531_v29  ;;  %v725_v29 = vsel %vm710_vm2, %v1649_v40, %v337_v14 }
  0xfa   :  { %512 = vrot.lane.b32.xlu2 %v1477_v46, %s1097_s13  ;;  %v950_v46 = vld [vmem:[%s1986_s0 + $0x3b0] sm:$0xff] }
  0xfb   :  { %448 = vrot.lane.b32.xlu1 %v967_v12, %s1098_s14 }
  0xfc   :  { %642 = vrot.lane.b32.xlu0 %v1016_v13, %s1100_s26  ;;  %v397_v51 = vpop.permute.xlu2 %396 }
  0xfd   :  { %v401_v59 = vpop.permute.xlu1 %400 }
  0xfe   :  { %v595_v9 = vpop.permute.xlu0 %594  ;;  %v742_v55 = vsel %vm727_vm3, %v725_v29, %v401_v59 }
  0xff   :  { %v794_v44 = vsel %vm778_vm6, %v777_v2, %v595_v9 }
 0x100   :  { %v811_v61 = vsel %vm795_vm7, %v794_v44, %v659_v10 }
 0x101   :  { %1025 = vmatpush.xpose.msk.msra.mxu0 %vm816_vm8, %v811_v61  ;;  %1043 = vmatpush.xpose.msk.msra.mxu1 %vm816_vm8, %v811_v61 }
 0x102   :  { %640 = vrot.lane.b32.xlu2 %v1264_v21, %s1100_s26 }
 0x103   :  { %382 = vrot.lane.b32.xlu1 %v950_v46, %s1099_s15 }
 0x104   :  { %576 = vrot.lane.b32.xlu0 %v1168_v7, %s1101_s27  ;;  %v525_v10 = vpop.permute.xlu2 %524 }
 0x105   :  { %v529_v24 = vpop.permute.xlu1 %528 }
 0x106   :  { %v465_v33 = vpop.permute.xlu0 %464 }
 0x107   :  { %v759_v11 = vsel %vm744_vm4, %v742_v55, %v465_v33  ;;  %v963_v55 = vld [vmem:[%s1986_s0 + $0x261] sm:$0xff] }
 0x108   :  { %v776_v21 = vsel %vm761_vm5, %v759_v11, %v529_v24 }
 0x109   :  { %v793_v14 = vsel %vm778_vm6, %v776_v21, %v593_v26 }
 0x10a   :  { %574 = vrot.lane.b32.xlu2 %v1173_v8, %s1101_s27  ;;  %v965_v8 = vld [vmem:[%s1986_s0 + $0x281] sm:$0xff] }
 0x10b   :  { %510 = vrot.lane.b32.xlu1 %v1565_v56, %s1097_s13  ;;  %v949_v56 = vld [vmem:[%s1986_s0 + $0x3a0] sm:$0xff] }
 0x10c   :  { %446 = vrot.lane.b32.xlu0 %v966_v37, %s1098_s14  ;;  %v653_v7 = vpop.permute.xlu2 %652  ;;  %v962_v37 = vld [vmem:[%s1986_s0 + $0x251] sm:$0xff] }
 0x10d   :  { %v657_v40 = vpop.permute.xlu1 %656 }
 0x10e   :  { %v399_v45 = vpop.permute.xlu0 %398  ;;  %v810_v48 = vsel %vm795_vm7, %v793_v14, %v657_v40  ;;  %v945_v14 = vld [vmem:[%s1986_s0 + $0x360] sm:$0xff] }
 0x10f   :  { %1026 = vmatpush.xpose.msk.msra.mxu0 %vm816_vm8, %v810_v48  ;;  %1044 = vmatpush.xpose.msk.msra.mxu1 %vm816_vm8, %v810_v48  ;;  %v741_v53 = vsel %vm727_vm3, %v724_v38, %v399_v45 }
 0x110   :  { %v758_v12 = vsel %vm744_vm4, %v741_v53, %v463_v25  ;;  %v964_v25 = vld [vmem:[%s1986_s0 + $0x271] sm:$0xff] }
 0x112   :  { %444 = vrot.lane.b32.xlu2 %v965_v8, %s1098_s14 }
 0x113   :  { %638 = vrot.lane.b32.xlu1 %v1269_v22, %s1100_s26 }
 0x114   :  { %380 = vrot.lane.b32.xlu0 %v949_v56, %s1099_s15  ;;  %v587_v26 = vpop.permute.xlu2 %586 }
 0x115   :  { %v591_v32 = vpop.permute.xlu1 %590 }
 0x116   :  { %v527_v43 = vpop.permute.xlu0 %526 }
 0x117   :  { %v775_v13 = vsel %vm761_vm5, %v758_v12, %v527_v43 }
 0x118   :  { %v792_v42 = vsel %vm778_vm6, %v775_v13, %v591_v32  ;;  %v961_v32 = vld [vmem:[%s1986_s0 + $0x241] sm:$0xff] }
 0x11a   :  { %378 = vrot.lane.b32.xlu2 %v948_v63, %s1099_s15 }
 0x11b   :  { %572 = vrot.lane.b32.xlu1 %v1144_v3, %s1101_s27  ;;  %v723_v3 = vsel %vm710_vm2, %v1631_v30, %v1658_v28  ;;  %v947_v28 = vld [vmem:[%s1986_s0 + $0x380] sm:$0xff] }
 0x11c   :  { %508 = vrot.lane.b32.xlu0 %v1570_v49, %s1097_s13  ;;  %v457_v22 = vpop.permute.xlu2 %456  ;;  %v740_v49 = vsel %vm727_vm3, %v723_v3, %v397_v51 }
 0x11d   :  { %v461_v60 = vpop.permute.xlu1 %460 }
 0x11e   :  { %v655_v47 = vpop.permute.xlu0 %654  ;;  %v757_v9 = vsel %vm744_vm4, %v740_v49, %v461_v60 }
 0x11f   :  { %v809_v59 = vsel %vm795_vm7, %v792_v42, %v655_v47  ;;  %v774_v46 = vsel %vm761_vm5, %v757_v9, %v525_v10 }
 0x120   :  { %1027 = vmatpush.xpose.msk.msra.mxu0 %vm816_vm8, %v809_v59  ;;  %1045 = vmatpush.xpose.msk.msra.mxu1 %vm816_vm8, %v809_v59 }
 0x122   :  { %506 = vrot.lane.b32.xlu2 %v1456_v35, %s1097_s13 }
 0x123   :  { %442 = vrot.lane.b32.xlu1 %v964_v25, %s1098_s14 }
 0x124   :  { %636 = vrot.lane.b32.xlu0 %v1274_v23, %s1100_s26  ;;  %v391_v2 = vpop.permute.xlu2 %390 }
 0x125   :  { %v395_v44 = vpop.permute.xlu1 %394 }
 0x126   :  { %v589_v61 = vpop.permute.xlu0 %588  ;;  %v739_v35 = vsel %vm727_vm3, %v1706_v54, %v395_v44 }
 0x127   :  { %v791_v29 = vsel %vm778_vm6, %v774_v46, %v589_v61 }
 0x128   :  { %v808_v30 = vsel %vm795_vm7, %v791_v29, %v653_v7 }
 0x129   :  { %1028 = vmatpush.xpose.msk.msra.mxu0 %vm816_vm8, %v808_v30  ;;  %1046 = vmatpush.xpose.msk.msra.mxu1 %vm816_vm8, %v808_v30 }
 0x12a   :  { %634 = vrot.lane.b32.xlu2 %v1243_v18, %s1100_s26 }
 0x12b   :  { %376 = vrot.lane.b32.xlu1 %v947_v28, %s1099_s15 }
 0x12c   :  { %570 = vrot.lane.b32.xlu0 %v1126_v0, %s1101_s27  ;;  %v519_v10 = vpop.permute.xlu2 %518 }
 0x12d   :  { %v523_v23 = vpop.permute.xlu1 %522 }
 0x12e   :  { %v459_v51 = vpop.permute.xlu0 %458 }
 0x12f   :  { %v756_v24 = vsel %vm744_vm4, %v739_v35, %v459_v51 }
 0x130   :  { %v773_v33 = vsel %vm761_vm5, %v756_v24, %v523_v23 }
 0x131   :  { %v790_v18 = vsel %vm778_vm6, %v773_v33, %v587_v26 }
 0x132   :  { %568 = vrot.lane.b32.xlu2 %v1149_v4, %s1101_s27 }
 0x133   :  { %504 = vrot.lane.b32.xlu1 %v1536_v50, %s1097_s13  ;;  %v946_v50 = vld [vmem:[%s1986_s0 + $0x370] sm:$0xff] }
 0x134   :  { %440 = vrot.lane.b32.xlu0 %v963_v55, %s1098_s14  ;;  %v647_v4 = vpop.permute.xlu2 %646 }
 0x135   :  { %v651_v0 = vpop.permute.xlu1 %650 }
 0x136   :  { %v393_v54 = vpop.permute.xlu0 %392  ;;  %v807_v11 = vsel %vm795_vm7, %v790_v18, %v651_v0 }
 0x137   :  { %1029 = vmatpush.xpose.msk.msra.mxu0 %vm816_vm8, %v807_v11  ;;  %1047 = vmatpush.xpose.msk.msra.mxu1 %vm816_vm8, %v807_v11  ;;  %v738_v40 = vsel %vm727_vm3, %v1710_v17, %v393_v54 }
 0x138   :  { %v755_v45 = vsel %vm744_vm4, %v738_v40, %v457_v22 }
 0x13a   :  { %438 = vrot.lane.b32.xlu2 %v962_v37, %s1098_s14 }
 0x13b   :  { %632 = vrot.lane.b32.xlu1 %v1248_v19, %s1100_s26 }
 0x13c   :  { %374 = vrot.lane.b32.xlu0 %v946_v50, %s1099_s15  ;;  %v581_v48 = vpop.permute.xlu2 %580 }
 0x13d   :  { %v585_v21 = vpop.permute.xlu1 %584 }
 0x13e   :  { %v521_v7 = vpop.permute.xlu0 %520 }
 0x13f   :  { %v772_v8 = vsel %vm761_vm5, %v755_v45, %v521_v7 }
 0x140   :  { %v789_v17 = vsel %vm778_vm6, %v772_v8, %v585_v21 }
 0x142   :  { %372 = vrot.lane.b32.xlu2 %v945_v14, %s1099_s15 }
 0x143   :  { %566 = vrot.lane.b32.xlu1 %v1131_v1, %s1101_s27  ;;  %v737_v1 = vsel %vm727_vm3, %v1645_v36, %v391_v2 }
 0x144   :  { %502 = vrot.lane.b32.xlu0 %v1541_v39, %s1097_s13  ;;  %v451_v39 = vpop.permute.xlu2 %450 }
 0x145   :  { %v455_v19 = vpop.permute.xlu1 %454 }
 0x146   :  { %v649_v56 = vpop.permute.xlu0 %648  ;;  %v754_v38 = vsel %vm744_vm4, %v737_v1, %v455_v19 }
 0x147   :  { %v806_v26 = vsel %vm795_vm7, %v789_v17, %v649_v56  ;;  %v771_v63 = vsel %vm761_vm5, %v754_v38, %v519_v10 }
 0x148   :  { %1030 = vmatpush.xpose.msk.msra.mxu0 %vm816_vm8, %v806_v26  ;;  %1048 = vmatpush.xpose.msk.msra.mxu1 %vm816_vm8, %v806_v26 }
 0x14a   :  { %500 = vrot.lane.b32.xlu2 %v1432_v62, %s1097_s13 }
 0x14b   :  { %436 = vrot.lane.b32.xlu1 %v961_v32, %s1098_s14 }
 0x14c   :  { %630 = vrot.lane.b32.xlu0 %v1253_v20, %s1100_s26  ;;  %v385_v22 = vpop.permute.xlu2 %384 }
 0x14d   :  { %v389_v43 = vpop.permute.xlu1 %388  ;;  %v734_v28 = vsel %vm727_vm3, %v1627_v6, %v385_v22 }
 0x14e   :  { %v583_v53 = vpop.permute.xlu0 %582  ;;  %v736_v62 = vsel %vm727_vm3, %v1691_v31, %v389_v43 }
 0x14f   :  { %v788_v12 = vsel %vm778_vm6, %v771_v63, %v583_v53 }
 0x150   :  { %v805_v13 = vsel %vm795_vm7, %v788_v12, %v647_v4 }
 0x151   :  { %1031 = vmatpush.xpose.msk.msra.mxu0 %vm816_vm8, %v805_v13  ;;  %1049 = vmatpush.xpose.msk.msra.mxu1 %vm816_vm8, %v805_v13 }
 0x153   :  { %628 = vrot.lane.b32.xlu1 %v1225_v15, %s1100_s26 }
 0x154   :  { %564 = vrot.lane.b32.xlu0 %v1154_v5, %s1101_s27  ;;  %v513_v5 = vpop.permute.xlu2 %512 }
 0x155   :  { %v517_v20 = vpop.permute.xlu1 %516 }
 0x156   :  { %v453_v36 = vpop.permute.xlu0 %452 }
 0x157   :  { %v753_v60 = vsel %vm744_vm4, %v736_v62, %v453_v36 }
 0x158   :  { %v770_v47 = vsel %vm761_vm5, %v753_v60, %v517_v20 }
 0x159   :  { %v787_v59 = vsel %vm778_vm6, %v770_v47, %v581_v48 }
 0x15c   :  { %v641_v2 = vpop.permute.xlu2 %640 }
 0x15d   :  { %v645_v42 = vpop.permute.xlu1 %644 }
 0x15e   :  { %v387_v25 = vpop.permute.xlu0 %386  ;;  %v804_v3 = vsel %vm795_vm7, %v787_v59, %v645_v42 }
 0x15f   :  { %1032 = vmatpush.xpose.msk.msra.mxu0 %vm816_vm8, %v804_v3  ;;  %1050 = vmatpush.xpose.msk.msra.mxu1 %vm816_vm8, %v804_v3  ;;  %v735_v31 = vsel %vm727_vm3, %v1695_v41, %v387_v25 }
 0x160   :  { %v752_v9 = vsel %vm744_vm4, %v735_v31, %v451_v39 }
 0x164   :  { %v575_v23 = vpop.permute.xlu2 %574 }
 0x165   :  { %v579_v15 = vpop.permute.xlu1 %578 }
 0x166   :  { %v515_v49 = vpop.permute.xlu0 %514 }
 0x167   :  { %v769_v44 = vsel %vm761_vm5, %v752_v9, %v515_v49 }
 0x168   :  { %v786_v29 = vsel %vm778_vm6, %v769_v44, %v579_v15 }
 0x16c   :  { %v445_v18 = vpop.permute.xlu2 %444 }
 0x16d   :  { %v449_v61 = vpop.permute.xlu1 %448 }
 0x16e   :  { %v643_v46 = vpop.permute.xlu0 %642  ;;  %v751_v41 = vsel %vm744_vm4, %v734_v28, %v449_v61 }
 0x16f   :  { %v803_v30 = vsel %vm795_vm7, %v786_v29, %v643_v46  ;;  %v768_v10 = vsel %vm761_vm5, %v751_v41, %v513_v5 }
 0x170   :  { %1033 = vmatpush.xpose.msk.msra.mxu0 %vm816_vm8, %v803_v30  ;;  %1051 = vmatpush.xpose.msk.msra.mxu1 %vm816_vm8, %v803_v30 }
 0x174   :  { %v379_v7 = vpop.permute.xlu2 %378 }
 0x175   :  { %v383_v35 = vpop.permute.xlu1 %382  ;;  %v731_v32 = vsel %vm727_vm3, %v1609_v58, %v379_v7 }
 0x176   :  { %v577_v51 = vpop.permute.xlu0 %576  ;;  %v733_v0 = vsel %vm727_vm3, %v1676_v27, %v383_v35  ;;  %v812_v35 = vld [vmem:[%s1987_s1] sm:$0xff] }
 0x177   :  { %v785_v24 = vsel %vm778_vm6, %v768_v10, %v577_v51  ;;  %v814_v51 = vld [vmem:[%s1988_s2] sm:$0xff]  ;;  %v815_v10 = vld [vmem:[%s1988_s2 + $0x8] sm:$0xff] }
 0x178   :  { %v802_v55 = vsel %vm795_vm7, %v785_v24, %v641_v2 }
 0x179   :  { %1034 = vmatpush.xpose.msk.msra.mxu0 %vm816_vm8, %v802_v55  ;;  %1052 = vmatpush.xpose.msk.msra.mxu1 %vm816_vm8, %v802_v55 }
 0x17c   :  { %v507_v48 = vpop.permute.xlu2 %506 }
 0x17d   :  { %v511_v33 = vpop.permute.xlu1 %510 }
 0x17e   :  { %v447_v6 = vpop.permute.xlu0 %446 }
 0x17f   :  { %v750_v54 = vsel %vm744_vm4, %v733_v0, %v447_v6 }
 0x180   :  { %v767_v11 = vsel %vm761_vm5, %v750_v54, %v511_v33 }
 0x181   :  { %v784_v4 = vsel %vm778_vm6, %v767_v11, %v575_v23 }
 0x184   :  { %v635_v1 = vpop.permute.xlu2 %634 }
 0x185   :  { %v639_v37 = vpop.permute.xlu1 %638 }
 0x186   :  { %v381_v50 = vpop.permute.xlu0 %380  ;;  %v801_v21 = vsel %vm795_vm7, %v784_v4, %v639_v37 }
 0x187   :  { %1035 = vmatpush.xpose.msk.msra.mxu0 %vm816_vm8, %v801_v21  ;;  %1053 = vmatpush.xpose.msk.msra.mxu1 %vm816_vm8, %v801_v21  ;;  %v732_v27 = vsel %vm727_vm3, %v1680_v16, %v381_v50 }
 0x188   :  { %v749_v45 = vsel %vm744_vm4, %v732_v27, %v445_v18 }
 0x18c   :  { %v569_v20 = vpop.permute.xlu2 %568 }
 0x18d   :  { %v573_v40 = vpop.permute.xlu1 %572 }
 0x18e   :  { %v509_v14 = vpop.permute.xlu0 %508 }
 0x18f   :  { %v766_v8 = vsel %vm761_vm5, %v749_v45, %v509_v14 }
 0x190   :  { %v783_v17 = vsel %vm778_vm6, %v766_v8, %v573_v40 }
 0x194   :  { %v439_v59 = vpop.permute.xlu2 %438 }
 0x195   :  { %v443_v19 = vpop.permute.xlu1 %442 }
 0x196   :  { %v637_v56 = vpop.permute.xlu0 %636  ;;  %v748_v16 = vsel %vm744_vm4, %v731_v32, %v443_v19 }
 0x197   :  { %v800_v26 = vsel %vm795_vm7, %v783_v17, %v637_v56  ;;  %v765_v43 = vsel %vm761_vm5, %v748_v16, %v507_v48 }
 0x198   :  { %1036 = vmatpush.xpose.msk.msra.mxu0 %vm816_vm8, %v800_v26  ;;  %1054 = vmatpush.xpose.msk.msra.mxu1 %vm816_vm8, %v800_v26 }
 0x19c   :  { %v373_v15 = vpop.permute.xlu2 %372 }
 0x19d   :  { %v377_v38 = vpop.permute.xlu1 %376  ;;  %v728_v61 = vsel %vm727_vm3, %v1583_v34, %v373_v15  ;;  %v813_v34 = vld [vmem:[%s1987_s1 + $0x8] sm:$0xff] }
 0x19e   :  { %v571_v39 = vpop.permute.xlu0 %570  ;;  %v730_v13 = vsel %vm727_vm3, %v1661_v52, %v377_v38 }
 0x19f   :  { %v782_v53 = vsel %vm778_vm6, %v765_v43, %v571_v39 }
 0x1a0   :  { %v799_v63 = vsel %vm795_vm7, %v782_v53, %v635_v1 }
 0x1a1   :  { %1037 = vmatpush.xpose.msk.msra.mxu0 %vm816_vm8, %v799_v63  ;;  %1055 = vmatpush.xpose.msk.msra.mxu1 %vm816_vm8, %v799_v63 }
 0x1a4   :  { %v501_v46 = vpop.permute.xlu2 %500 }
 0x1a5   :  { %v505_v12 = vpop.permute.xlu1 %504 }
 0x1a6   :  { %v441_v58 = vpop.permute.xlu0 %440 }
 0x1a7   :  { %v747_v62 = vsel %vm744_vm4, %v730_v13, %v441_v58 }
 0x1a8   :  { %v764_v36 = vsel %vm761_vm5, %v747_v62, %v505_v12 }
 0x1a9   :  { %v781_v60 = vsel %vm778_vm6, %v764_v36, %v569_v20 }
 0x1ad   :  { %v633_v22 = vpop.permute.xlu1 %632 }
 0x1ae   :  { %v375_v47 = vpop.permute.xlu0 %374  ;;  %v798_v42 = vsel %vm795_vm7, %v781_v60, %v633_v22 }
 0x1af   :  { %1038 = vmatpush.xpose.msk.msra.mxu0 %vm816_vm8, %v798_v42  ;;  %1056 = vmatpush.xpose.msk.msra.mxu1 %vm816_vm8, %v798_v42  ;;  %v729_v52 = vsel %vm727_vm3, %v1665_v57, %v375_v47 }
 0x1b0   :  { %v746_v5 = vsel %vm744_vm4, %v729_v52, %v439_v59 }
 0x1b5   :  { %v567_v25 = vpop.permute.xlu1 %566 }
 0x1b6   :  { %v503_v3 = vpop.permute.xlu0 %502 }
 0x1b7   :  { %v763_v49 = vsel %vm761_vm5, %v746_v5, %v503_v3 }
 0x1b8   :  { %v780_v2 = vsel %vm778_vm6, %v763_v49, %v567_v25 }
 0x1bd   :  { %v437_v31 = vpop.permute.xlu1 %436 }
 0x1be   :  { %v631_v9 = vpop.permute.xlu0 %630  ;;  %v745_v57 = vsel %vm744_vm4, %v728_v61, %v437_v31 }
 0x1bf   :  { %v797_v44 = vsel %vm795_vm7, %v780_v2, %v631_v9  ;;  %v762_v30 = vsel %vm761_vm5, %v745_v57, %v501_v46 }
 0x1c0   :  { %1039 = vmatpush.xpose.msk.msra.mxu0 %vm816_vm8, %v797_v44  ;;  %1057 = vmatpush.xpose.msk.msra.mxu1 %vm816_vm8, %v797_v44 }
 0x1c5   :  { %v629_v29 = vpop.permute.xlu1 %628 }
 0x1c6   :  { %v565_v28 = vpop.permute.xlu0 %564 }
 0x1c7   :  { %v779_v41 = vsel %vm778_vm6, %v762_v30, %v565_v28 }
 0x1c8   :  { %v796_v23 = vsel %vm795_vm7, %v779_v41, %v629_v29 }
 0x1c9   :  { %1040 = vmatpush.xpose.msk.msra.mxu0 %vm816_vm8, %v796_v23  ;;  %1058 = vmatpush.xpose.msk.msra.mxu1 %vm816_vm8, %v796_v23 }
 0x1cc   :  { %1041 = vmatmul.msk.f32.vlgmr.msra.gmra.mxu0 %vm816_vm8, %v812_v35  ;;  %1042 = vmatmul.msk.f32.vlgmr.msra.gmra.mxu1 %vm816_vm8, %v813_v34 }
 0x249   :  { %v888_v24 = vpop.f32.mrf.mxu0  ;;  %v891_v55 = vpop.f32.mrf.mxu1 }
 0x24a   :  { %v889_v33 = vadd.f32 %v888_v24, %v814_v51  ;;  %v892_v0 = vadd.f32 %v891_v55, %v815_v10 }
 0x24c   :  { %v894_v6 = vmax.f32 %v889_v33, 0.0 }
 0x24e   :  { %v895_v18 = vadd.f32 %v894_v6, %v892_v0 }
 0x250   :  { %896 = vst [vmem:[#allocation2] sm:$0xff] %v895_v18 }
 0x251   :  { %907 = dma.vmem_to_hbm [thread:$0]  %s903_s6, 128, %s905_s7, [#allocation3]  }
 0x252   :  { %1092 = dma.done.wait [#allocation3], 128  }
 0x253   :  { %1093 = vsyncadd [#allocation3], 4294967168 }
 0x254   :  { %912 = vsyncpa [#allocation3], 1 }

</bundles_post_ra>
